<compile_context>
chip_gen: v5e
topology: v5e:2x2
jax: 0.10.0
libtpu: 0.0.40
codegen_flags: <defaults>
</compile_context>

<pallas_src>
import jax
import jax.numpy as jnp
from jax.experimental import pallas as pl
from jax.experimental.pallas import tpu as pltpu


def _box_features_kernel(x_ref, w1_ref, w2_ref, w3_ref, w4_ref, o_ref):
    # x_ref: (TM, 7*P) f32; w1_ref: (7*P, 32*P) f32; w2/3/4_ref: block-diag
    # bf16 (or f32); o_ref: (TM, 64*P) out_dtype.  All matmuls accumulate f32.
    h = jnp.dot(x_ref[...], w1_ref[...], preferred_element_type=jnp.float32)
    h = jnp.maximum(h, 0.0).astype(w2_ref.dtype)
    h = jnp.dot(h, w2_ref[...], preferred_element_type=jnp.float32)
    h = jnp.maximum(h, 0.0).astype(w3_ref.dtype)
    h = jnp.dot(h, w3_ref[...], preferred_element_type=jnp.float32)
    h = jnp.maximum(h, 0.0).astype(w4_ref.dtype)
    h = jnp.dot(h, w4_ref[...], preferred_element_type=jnp.float32)
    h = jnp.maximum(h, 0.0)
    o_ref[...] = h.astype(o_ref.dtype)


def _round_up(a, b):
    return (a + b - 1) // b * b


def box_features_forward(x, w1, w2, w3, w4, *, pack=4, tile_rows=8192,
                         min_grid_steps=2, compute_dtype=jnp.bfloat16,
                         out_dtype=jnp.float32,
                         vmem_limit_bytes=48 * 1024 * 1024):
    """x: (B, N, 7) float32. wK: PyTorch Conv2d weights (out, in, 1, 1), no bias.
    Returns (B, N, 64) in `out_dtype`.

    compute_dtype: operand dtype for layers 2-4 (layer 1 is always f32 so the
      raw box features keep full precision); f32 accumulation everywhere.
      jnp.bfloat16 (default) is the right choice on v5e/v6e/v7x.
    out_dtype: jnp.bfloat16 halves the dominant HBM writeback if the consumer
      accepts it (note: differs from the torch module's f32 output).
    min_grid_steps: keep >=2 so v7x's second TensorCore is never idle (use 4
      for a little extra scheduling slack on v7x)."""
    B, N, C_in = x.shape
    assert C_in == 7
    C_out = w4.shape[0]  # 64
    P = pack

    M = B * N
    Mp = pl.cdiv(max(M, 1), P)                       # packed rows needed
    # Adaptive tile: pad waste is < 8 rows per tile instead of up to a full TM.
    n_tiles = max(pl.cdiv(Mp, tile_rows), min_grid_steps)
    TM = _round_up(pl.cdiv(Mp, n_tiles), 8)
    Mp_pad = _round_up(Mp, TM)
    M_pad = Mp_pad * P

    # Flatten and zero-pad the box axis.  All layers are bias-free, so padded
    # (all-zero) boxes produce exactly zero outputs and are sliced off below.
    # NOTE: never reduce over out_packed before the [:M] slice if a bias is
    # ever added to these layers.
    x2d = x.reshape(M, C_in).astype(jnp.float32)
    if M_pad != M:
        x2d = jnp.pad(x2d, ((0, M_pad - M), (0, 0)))
    # Pack P boxes per kernel row; row-major reshape keeps the HBM byte layout,
    # so packing/unpacking is free.
    x_packed = x2d.reshape(Mp_pad, C_in * P)

    # (out, in, 1, 1) -> (in, out), then P-fold block-diagonal replication so
    # [x_0 | ... | x_{P-1}] @ blockdiag(W,...,W) == [x_0 W | ... | x_{P-1} W].
    def blockdiag(w, dtype):
        w_io = jnp.transpose(w[:, :, 0, 0]).astype(dtype)        # (in, out)
        return jnp.kron(jnp.eye(P, dtype=dtype), w_io)           # (in*P, out*P)

    ws = [blockdiag(w1, jnp.float32),          # layer 1 stays f32 (precision)
          blockdiag(w2, compute_dtype),
          blockdiag(w3, compute_dtype),
          blockdiag(w4, compute_dtype)]

    grid = (Mp_pad // TM,)
    # Useful FLOPs (un-kron'd weights), not the block-diagonal ones.
    flops = 2 * M_pad * sum(w.shape[0] * w.shape[1] for w in (w1, w2, w3, w4))
    bytes_accessed = (x_packed.size * x_packed.dtype.itemsize
                      + M_pad * C_out * jnp.dtype(out_dtype).itemsize
                      + sum(wi.size * wi.dtype.itemsize for wi in ws))

    out_packed = pl.pallas_call(
        _box_features_kernel,
        out_shape=jax.ShapeDtypeStruct((Mp_pad, C_out * P), out_dtype),
        grid=grid,
        in_specs=[
            pl.BlockSpec((TM, C_in * P), lambda i: (i, 0)),
            pl.BlockSpec(ws[0].shape, lambda i: (0, 0)),   # weights VMEM-resident
            pl.BlockSpec(ws[1].shape, lambda i: (0, 0)),
            pl.BlockSpec(ws[2].shape, lambda i: (0, 0)),
            pl.BlockSpec(ws[3].shape, lambda i: (0, 0)),
        ],
        out_specs=pl.BlockSpec((TM, C_out * P), lambda i: (i, 0)),
        compiler_params=pltpu.CompilerParams(
            dimension_semantics=("parallel",),
            vmem_limit_bytes=vmem_limit_bytes,
        ),
        cost_estimate=pl.CostEstimate(
            flops=flops, transcendentals=0, bytes_accessed=bytes_accessed),
    )(x_packed, *ws)

    out = out_packed.reshape(M_pad, C_out)[:M]
    return out.reshape(B, N, C_out)


def _reference(x, weights):
    # Pure-JAX f32 reference mirroring the PyTorch 1x1-conv semantics.
    h = x.astype(jnp.float32)
    for w in weights:
        h = jnp.maximum(
            jnp.einsum("bnc,oc->bno", h, w[:, :, 0, 0].astype(jnp.float32),
                       preferred_element_type=jnp.float32), 0.0)
    return h


if __name__ == "__main__":
    key = jax.random.PRNGKey(0)
    kx, k1, k2, k3, k4 = jax.random.split(key, 5)

    B, N = 2, 8  # frames, boxes per frame, 7 features per box
    x = jax.random.normal(kx, (B, N, 7), dtype=jnp.float32)

    # Deterministic synthetic conv weights (out, in, 1, 1), no bias.
    w1 = 0.1 * jax.random.normal(k1, (32, 7, 1, 1), dtype=jnp.float32)
    w2 = 0.1 * jax.random.normal(k2, (32, 32, 1, 1), dtype=jnp.float32)
    w3 = 0.1 * jax.random.normal(k3, (64, 32, 1, 1), dtype=jnp.float32)
    w4 = 0.1 * jax.random.normal(k4, (64, 64, 1, 1), dtype=jnp.float32)
    weights = (w1, w2, w3, w4)

    ref = _reference(x, weights)

    # 1) all-f32 path: exact parity with the torch module.
    out_f32 = jax.block_until_ready(
        box_features_forward(x, *weights, compute_dtype=jnp.float32))
    assert out_f32.shape == (B, N, 64) and out_f32.dtype == jnp.float32
    assert jnp.allclose(out_f32, ref, atol=1e-5, rtol=1e-5)

    # 2) default path: bf16 operands for layers 2-4, f32 layer 1 / accumulate,
    #    f32 output.
    out_def = jax.block_until_ready(box_features_forward(x, *weights))
    assert out_def.shape == (B, N, 64) and out_def.dtype == jnp.float32
    assert jnp.allclose(out_def, ref, atol=5e-2, rtol=5e-2)

    # 3) bf16 output path (halves HBM writeback for consumers that accept it).
    out_bf = jax.block_until_ready(
        box_features_forward(x, *weights, out_dtype=jnp.bfloat16))
    assert out_bf.dtype == jnp.bfloat16
    assert jnp.allclose(out_bf.astype(jnp.float32), ref, atol=5e-2, rtol=5e-2)

    # 4) ragged M (exercises the pad / tail-slice path; N not a multiple of P).
    xr = jax.random.normal(kx, (1, 5, 7), dtype=jnp.float32)
    out_r = jax.block_until_ready(
        box_features_forward(xr, *weights, compute_dtype=jnp.float32))
    assert out_r.shape == (1, 5, 64)
    assert jnp.allclose(out_r, _reference(xr, weights), atol=1e-5, rtol=1e-5)

    print("KERNEL_OK")
</pallas_src>

<mosaic_0001>
module attributes {stable_mosaic.version = 11 : i64} {
  func.func @_box_features_kernel(%arg0: i32, %arg1: memref<8x28xf32, #tpu.memory_space<vmem>>, %arg2: memref<28x128xf32, #tpu.memory_space<vmem>>, %arg3: memref<128x128xf32, #tpu.memory_space<vmem>>, %arg4: memref<128x256xf32, #tpu.memory_space<vmem>>, %arg5: memref<256x256xf32, #tpu.memory_space<vmem>>, %arg6: memref<8x256xf32, #tpu.memory_space<vmem>>) attributes {dimension_semantics = [#tpu.dimension_semantics<parallel>], iteration_bounds = array<i64: 1>, scalar_prefetch = 0 : i64, scratch_operands = 0 : i64, tpu.core_type = #tpu.core_type<tc>, window_params = [{transform_indices = @transform_0, window_bounds = array<i64: 8, 28>}, {pipeline_mode = #tpu.pipeline_mode<synchronous>, transform_indices = @transform_1, window_bounds = array<i64: 28, 128>}, {pipeline_mode = #tpu.pipeline_mode<synchronous>, transform_indices = @transform_2, window_bounds = array<i64: 128, 128>}, {pipeline_mode = #tpu.pipeline_mode<synchronous>, transform_indices = @transform_3, window_bounds = array<i64: 128, 256>}, {pipeline_mode = #tpu.pipeline_mode<synchronous>, transform_indices = @transform_4, window_bounds = array<i64: 256, 256>}, {transform_indices = @transform_5, window_bounds = array<i64: 8, 256>}]} {
    %c0 = arith.constant 0 : index
    %c0_0 = arith.constant 0 : index
    %0 = vector.load %arg1[%c0, %c0_0] : memref<8x28xf32, #tpu.memory_space<vmem>>, vector<8x28xf32>
    %c0_1 = arith.constant 0 : index
    %c0_2 = arith.constant 0 : index
    %1 = vector.load %arg2[%c0_1, %c0_2] : memref<28x128xf32, #tpu.memory_space<vmem>>, vector<28x128xf32>
    %cst = arith.constant dense<0.000000e+00> : vector<8x128xf32>
    %2 = tpu.matmul %0, %1, %cst {dimension_numbers = #tpu.dot_dimension_numbers<[1], [0], [0], [1], [0, 0, 1, 1], [], []>} : vector<8x28xf32>, vector<28x128xf32>, vector<8x128xf32> -> vector<8x128xf32>
    %cst_3 = arith.constant 0.000000e+00 : f32
    %3 = vector.broadcast %cst_3 : f32 to vector<8x128xf32>
    %4 = arith.maximumf %2, %3 : vector<8x128xf32>
    %c0_4 = arith.constant 0 : index
    %c0_5 = arith.constant 0 : index
    %5 = vector.load %arg3[%c0_4, %c0_5] : memref<128x128xf32, #tpu.memory_space<vmem>>, vector<128x128xf32>
    %cst_6 = arith.constant dense<0.000000e+00> : vector<8x128xf32>
    %6 = tpu.matmul %4, %5, %cst_6 {dimension_numbers = #tpu.dot_dimension_numbers<[1], [0], [0], [1], [0, 0, 1, 1], [], []>} : vector<8x128xf32>, vector<128x128xf32>, vector<8x128xf32> -> vector<8x128xf32>
    %cst_7 = arith.constant 0.000000e+00 : f32
    %7 = vector.broadcast %cst_7 : f32 to vector<8x128xf32>
    %8 = arith.maximumf %6, %7 : vector<8x128xf32>
    %c0_8 = arith.constant 0 : index
    %c0_9 = arith.constant 0 : index
    %9 = vector.load %arg4[%c0_8, %c0_9] : memref<128x256xf32, #tpu.memory_space<vmem>>, vector<128x256xf32>
    %cst_10 = arith.constant dense<0.000000e+00> : vector<8x256xf32>
    %10 = tpu.matmul %8, %9, %cst_10 {dimension_numbers = #tpu.dot_dimension_numbers<[1], [0], [0], [1], [0, 0, 1, 1], [], []>} : vector<8x128xf32>, vector<128x256xf32>, vector<8x256xf32> -> vector<8x256xf32>
    %cst_11 = arith.constant 0.000000e+00 : f32
    %11 = vector.broadcast %cst_11 : f32 to vector<8x256xf32>
    %12 = arith.maximumf %10, %11 : vector<8x256xf32>
    %c0_12 = arith.constant 0 : index
    %c0_13 = arith.constant 0 : index
    %13 = vector.load %arg5[%c0_12, %c0_13] : memref<256x256xf32, #tpu.memory_space<vmem>>, vector<256x256xf32>
    %cst_14 = arith.constant dense<0.000000e+00> : vector<8x256xf32>
    %14 = tpu.matmul %12, %13, %cst_14 {dimension_numbers = #tpu.dot_dimension_numbers<[1], [0], [0], [1], [0, 0, 1, 1], [], []>} : vector<8x256xf32>, vector<256x256xf32>, vector<8x256xf32> -> vector<8x256xf32>
    %cst_15 = arith.constant 0.000000e+00 : f32
    %15 = vector.broadcast %cst_15 : f32 to vector<8x256xf32>
    %16 = arith.maximumf %14, %15 : vector<8x256xf32>
    %c0_16 = arith.constant 0 : index
    %c0_17 = arith.constant 0 : index
    %17 = vector.load %arg6[%c0_16, %c0_17] : memref<8x256xf32, #tpu.memory_space<vmem>>, vector<8x256xf32>
    tpu.vector_store %arg6[%c0_16, %c0_17], %16 {strides = array<i32>} : memref<8x256xf32, #tpu.memory_space<vmem>>, vector<8x256xf32>,
    return
  }
  func.func @transform_0(%arg0: i32) -> (i32, i32) {
    %c0_i32 = arith.constant 0 : i32
    %c0_i32_0 = arith.constant 0 : i32
    return %arg0, %c0_i32 : i32, i32
  }
  func.func @transform_1(%arg0: i32) -> (i32, i32) {
    %c0_i32 = arith.constant 0 : i32
    %c0_i32_0 = arith.constant 0 : i32
    %c0_i32_1 = arith.constant 0 : i32
    return %c0_i32, %c0_i32_0 : i32, i32
  }
  func.func @transform_2(%arg0: i32) -> (i32, i32) {
    %c0_i32 = arith.constant 0 : i32
    %c0_i32_0 = arith.constant 0 : i32
    %c0_i32_1 = arith.constant 0 : i32
    return %c0_i32, %c0_i32_0 : i32, i32
  }
  func.func @transform_3(%arg0: i32) -> (i32, i32) {
    %c0_i32 = arith.constant 0 : i32
    %c0_i32_0 = arith.constant 0 : i32
    %c0_i32_1 = arith.constant 0 : i32
    return %c0_i32, %c0_i32_0 : i32, i32
  }
  func.func @transform_4(%arg0: i32) -> (i32, i32) {
    %c0_i32 = arith.constant 0 : i32
    %c0_i32_0 = arith.constant 0 : i32
    %c0_i32_1 = arith.constant 0 : i32
    return %c0_i32, %c0_i32_0 : i32, i32
  }
  func.func @transform_5(%arg0: i32) -> (i32, i32) {
    %c0_i32 = arith.constant 0 : i32
    %c0_i32_0 = arith.constant 0 : i32
    return %arg0, %c0_i32 : i32, i32
  }
}

</mosaic_0001>

<bundles_post_ra>
// kernel: tpu_custom_call.1
= control target key start
LH: loop header
LB: loop body
LE: loop exit
PB: predicated region body
PF: predicated region fallthrough
CT: control target
= control target key end

     0   :  { %10 = vsyncpa [#allocation3], 0  ;;  %s631_s0 = inlined_call_operand.hbm [shape: f32[8,28], index: 0, kind: input, shape index: {}]   ;;  %s632_s1 = inlined_call_operand.hbm [shape: f32[28,128], index: 1, kind: input, shape index: {}]   ;;  %s633_s2 = inlined_call_operand.hbm [shape: f32[128,128], index: 2, kind: input, shape index: {}]   ;;  %s634_s3 = inlined_call_operand.hbm [shape: f32[128,256], index: 3, kind: input, shape index: {}]   ;;  %s635_s4 = inlined_call_operand.hbm [shape: f32[256,256], index: 4, kind: input, shape index: {}]   ;;  %s636_s5 = inlined_call_operand.hbm [shape: f32[8,256], index: 5, kind: output, shape index: {}]  }
   0x1   :  { %11 = vsyncpa [#allocation6], 0 }
   0x2   :  { %12 = vsyncpa [#allocation9], 0  ;;  %s29_s20 = sshll.u32 %s632_s1, 4  ;;  %s30_s20 = int_to_ptr.hbm [resolvable:$true] %s29_s20 }
   0x3   :  { %13 = vsyncpa [#allocation4], 0  ;;  %s573_s21 = smov [#allocation5]   ;;  %s55_s25 = sshll.u32 %s634_s3, 4  ;;  %s56_s25 = int_to_ptr.hbm [resolvable:$true] %s55_s25 }
   0x4   :  { %s31_s22 = sshll.u32 %s573_s21, 4  ;;  %s574_s26 = smov 128   ;;  %s32_s22 = int_to_ptr.vmem [resolvable:$true] %s31_s22 }
   0x5   :  { %s575_s27 = smov 8   ;;  %s576_s28 = smov [#allocation8]  }
   0x6   :  { %37 = dma.hbm_to_vmem [thread:$0]  %s30_s20, 512, %s32_s22, [#allocation6], %s574_s26, %s574_s26, %s575_s27  }
   0x7   :  { %s57_s29 = sshll.u32 %s576_s28, 4  ;;  %s577_s30 = smov 256   ;;  %s58_s29 = int_to_ptr.vmem [resolvable:$true] %s57_s29 }
   0x8   :  { %s578_s6 = smov 16   ;;  %s19_s8 = sshll.u32 %s631_s0, 4  ;;  %s20_s8 = int_to_ptr.hbm [resolvable:$true] %s19_s8 }
   0x9   :  { %63 = dma.hbm_to_vmem [thread:$0]  %s56_s25, 4096, %s58_s29, [#allocation9], %s577_s30, %s577_s30, %s578_s6  }
   0xa   :  { %s579_s9 = smov [#allocation2]   ;;  %s42_s12 = sshll.u32 %s633_s2, 4  ;;  %s43_s12 = int_to_ptr.hbm [resolvable:$true] %s42_s12 }
   0xb   :  { %s21_s10 = sshll.u32 %s579_s9, 4  ;;  %s580_s13 = smov [#allocation7]   ;;  %s22_s10 = int_to_ptr.vmem [resolvable:$true] %s21_s10 }
   0xc   :  { %24 = dma.hbm_to_vmem [thread:$0]  %s20_s8, 128, %s22_s10, [#allocation3]  }
   0xd   :  { %s44_s14 = sshll.u32 %s580_s13, 4  ;;  %s68_s17 = sshll.u32 %s635_s4, 4  ;;  %s45_s14 = int_to_ptr.vmem [resolvable:$true] %s44_s14  ;;  %s69_s17 = int_to_ptr.hbm [resolvable:$true] %s68_s17 }
   0xe   :  { %50 = dma.hbm_to_vmem [thread:$0]  %s43_s12, 2048, %s45_s14, [#allocation6], %s574_s26, %s574_s26, %s575_s27  }
   0xf   :  { %s581_s0 = smov [#allocation10]  }
  0x10   :  { %s70_s18 = sshll.u32 %s581_s0, 4  ;;  %s71_s18 = int_to_ptr.vmem [resolvable:$true] %s70_s18 }
  0x11   :  { %76 = dma.hbm_to_vmem [thread:$0]  %s69_s17, 8192, %s71_s18, [#allocation9], %s577_s30, %s577_s30, %s578_s6  }
  0x12   :  { %565 = dma.done.wait [#allocation3], 128  }
  0x13   :  { %566 = vsyncadd [#allocation3], 4294967168 }
  0x14   :  { %567 = dma.done.wait [#allocation6], 2560  }
  0x15   :  { %568 = vsyncadd [#allocation6], 4294964736 }
  0x16   :  { %569 = dma.done.wait [#allocation9], 12288  }
  0x17   :  { %570 = vsyncadd [#allocation9], 4294955008  ;;  %vm106_vm0 = vcmask 1043456   ;;  %v101_v0 = vld [vmem:[#allocation5 + $0x18] sm:$0xf]  ;;  %v100_v1 = vld [vmem:[#allocation5 + $0x10] sm:$0xff] }
  0x18   :  { %409 = vmatpush.msk.msra.mxu0 %vm106_vm0, %v101_v0  ;;  %v146_v2 = vld [vmem:[#allocation7 + $0x78] sm:$0xff]  ;;  %v99_v3 = vld [vmem:[#allocation5 + $0x8] sm:$0xff]  ;;  %v145_v4 = vld [vmem:[#allocation7 + $0x70] sm:$0xff]  ;;  %vm102_vm1 = vcmask 228352   ;;  %s582_s2 = smov [#allocation11]   ;;  %s397_s21 = sshll.u32 %s636_s5, 4  ;;  %s398_s21 = int_to_ptr.hbm [resolvable:$true] %s397_s21 }
  0x19   :  { %147 = vmatpush.msra.mxu1 %v146_v2  ;;  %v144_v5 = vld [vmem:[#allocation7 + $0x68] sm:$0xff]  ;;  %v98_v6 = vld [vmem:[#allocation5] sm:$0xff]  ;;  %v97_v7 = vld [vmem:[#allocation2] sm:$0xff]  ;;  %s395_s4 = sshll.u32 %s582_s2, 4  ;;  %s396_s4 = int_to_ptr.vmem [resolvable:$true] %s395_s4 }
  0x1a   :  { %123 = vmatpush.msra.mxu0 %v100_v1  ;;  %v143_v8 = vld [vmem:[#allocation7 + $0x60] sm:$0xff]  ;;  %v142_v9 = vld [vmem:[#allocation7 + $0x58] sm:$0xff]  ;;  %v141_v10 = vld [vmem:[#allocation7 + $0x50] sm:$0xff] }
  0x1b   :  { %148 = vmatpush.msra.mxu1 %v145_v4  ;;  %v140_v11 = vld [vmem:[#allocation7 + $0x48] sm:$0xff]  ;;  %v139_v12 = vld [vmem:[#allocation7 + $0x40] sm:$0xff]  ;;  %v138_v13 = vld [vmem:[#allocation7 + $0x38] sm:$0xff] }
  0x1c   :  { %124 = vmatpush.msra.mxu0 %v99_v3  ;;  %v137_v14 = vld [vmem:[#allocation7 + $0x30] sm:$0xff]  ;;  %v136_v15 = vld [vmem:[#allocation7 + $0x28] sm:$0xff]  ;;  %v135_v16 = vld [vmem:[#allocation7 + $0x20] sm:$0xff] }
  0x1d   :  { %149 = vmatpush.msra.mxu1 %v144_v5  ;;  %v134_v17 = vld [vmem:[#allocation7 + $0x18] sm:$0xff]  ;;  %v133_v18 = vld [vmem:[#allocation7 + $0x10] sm:$0xff]  ;;  %v132_v19 = vld [vmem:[#allocation7 + $0x8] sm:$0xff] }
  0x1e   :  { %125 = vmatpush.msra.mxu0 %v98_v6  ;;  %v131_v20 = vld [vmem:[#allocation7] sm:$0xff]  ;;  %v198_v21 = vld [vmem:[#allocation8 + $0xf0] sm:$0xff]  ;;  %v199_v22 = vld [vmem:[#allocation8 + $0xf8] sm:$0xff] }
  0x1f   :  { %410 = vmatmul.msk.f32.vlgmr.msra.gmra.mxu0 %vm102_vm1, %v97_v7  ;;  %150 = vmatpush.msra.mxu1 %v143_v8  ;;  %v196_v23 = vld [vmem:[#allocation8 + $0xe0] sm:$0xff]  ;;  %v197_v24 = vld [vmem:[#allocation8 + $0xe8] sm:$0xff]  ;;  %v194_v25 = vld [vmem:[#allocation8 + $0xd0] sm:$0xff] }
  0x20   :  { %200 = vmatpush.msra.mxu2 %v198_v21  ;;  %220 = vmatpush.msra.mxu3 %v199_v22  ;;  %v195_v26 = vld [vmem:[#allocation8 + $0xd8] sm:$0xff]  ;;  %v192_v27 = vld [vmem:[#allocation8 + $0xc0] sm:$0xff]  ;;  %v193_v28 = vld [vmem:[#allocation8 + $0xc8] sm:$0xff] }
  0x21   :  { %151 = vmatpush.msra.mxu1 %v142_v9  ;;  %v190_v29 = vld [vmem:[#allocation8 + $0xb0] sm:$0xff]  ;;  %v191_v30 = vld [vmem:[#allocation8 + $0xb8] sm:$0xff]  ;;  %v188_v31 = vld [vmem:[#allocation8 + $0xa0] sm:$0xff] }
  0x22   :  { %201 = vmatpush.msra.mxu2 %v196_v23  ;;  %221 = vmatpush.msra.mxu3 %v197_v24  ;;  %v189_v32 = vld [vmem:[#allocation8 + $0xa8] sm:$0xff]  ;;  %v186_v33 = vld [vmem:[#allocation8 + $0x90] sm:$0xff]  ;;  %v187_v34 = vld [vmem:[#allocation8 + $0x98] sm:$0xff] }
  0x23   :  { %152 = vmatpush.msra.mxu1 %v141_v10  ;;  %v184_v35 = vld [vmem:[#allocation8 + $0x80] sm:$0xff]  ;;  %v185_v36 = vld [vmem:[#allocation8 + $0x88] sm:$0xff]  ;;  %v182_v37 = vld [vmem:[#allocation8 + $0x70] sm:$0xff] }
  0x24   :  { %202 = vmatpush.msra.mxu2 %v194_v25  ;;  %222 = vmatpush.msra.mxu3 %v195_v26  ;;  %v183_v38 = vld [vmem:[#allocation8 + $0x78] sm:$0xff]  ;;  %v180_v39 = vld [vmem:[#allocation8 + $0x60] sm:$0xff]  ;;  %v181_v40 = vld [vmem:[#allocation8 + $0x68] sm:$0xff] }
  0x25   :  { %153 = vmatpush.msra.mxu1 %v140_v11  ;;  %v178_v41 = vld [vmem:[#allocation8 + $0x50] sm:$0xff]  ;;  %v179_v42 = vld [vmem:[#allocation8 + $0x58] sm:$0xff]  ;;  %v176_v43 = vld [vmem:[#allocation8 + $0x40] sm:$0xff] }
  0x26   :  { %203 = vmatpush.msra.mxu2 %v192_v27  ;;  %223 = vmatpush.msra.mxu3 %v193_v28  ;;  %v177_v44 = vld [vmem:[#allocation8 + $0x48] sm:$0xff]  ;;  %v174_v45 = vld [vmem:[#allocation8 + $0x30] sm:$0xff]  ;;  %v175_v46 = vld [vmem:[#allocation8 + $0x38] sm:$0xff] }
  0x27   :  { %154 = vmatpush.msra.mxu1 %v139_v12  ;;  %v172_v47 = vld [vmem:[#allocation8 + $0x20] sm:$0xff]  ;;  %v173_v48 = vld [vmem:[#allocation8 + $0x28] sm:$0xff]  ;;  %v170_v51 = vld [vmem:[#allocation8 + $0x10] sm:$0xff] }
  0x28   :  { %204 = vmatpush.msra.mxu2 %v190_v29  ;;  %224 = vmatpush.msra.mxu3 %v191_v30  ;;  %v171_v52 = vld [vmem:[#allocation8 + $0x18] sm:$0xff]  ;;  %v168_v53 = vld [vmem:[#allocation8] sm:$0xff]  ;;  %v169_v54 = vld [vmem:[#allocation8 + $0x8] sm:$0xff] }
  0x29   :  { %155 = vmatpush.msra.mxu1 %v138_v13  ;;  %v272_v55 = vld [vmem:[#allocation10 + $0xf0] sm:$0xff]  ;;  %v273_v57 = vld [vmem:[#allocation10 + $0xf8] sm:$0xff]  ;;  %v270_v59 = vld [vmem:[#allocation10 + $0xe0] sm:$0xff] }
  0x2a   :  { %205 = vmatpush.msra.mxu2 %v188_v31  ;;  %225 = vmatpush.msra.mxu3 %v189_v32  ;;  %v304_v56 = vld [vmem:[#allocation10 + $0x1f0] sm:$0xff]  ;;  %v305_v58 = vld [vmem:[#allocation10 + $0x1f8] sm:$0xff]  ;;  %v302_v60 = vld [vmem:[#allocation10 + $0x1e0] sm:$0xff] }
  0x2b   :  { %156 = vmatpush.msra.mxu1 %v137_v14  ;;  %306 = vmatpush.msrb.mxu0 %v272_v55  ;;  %v271_v61 = vld [vmem:[#allocation10 + $0xe8] sm:$0xff]  ;;  %v268_v63 = vld [vmem:[#allocation10 + $0xd0] sm:$0xff]  ;;  %v269_v1 = vld [vmem:[#allocation10 + $0xd8] sm:$0xff] }
  0x2c   :  { %206 = vmatpush.msra.mxu2 %v186_v33  ;;  %226 = vmatpush.msra.mxu3 %v187_v34  ;;  %v303_v62 = vld [vmem:[#allocation10 + $0x1e8] sm:$0xff]  ;;  %v300_v0 = vld [vmem:[#allocation10 + $0x1d0] sm:$0xff]  ;;  %v301_v2 = vld [vmem:[#allocation10 + $0x1d8] sm:$0xff] }
  0x2d   :  { %157 = vmatpush.msra.mxu1 %v136_v15  ;;  %307 = vmatpush.msrb.mxu0 %v270_v59  ;;  %v266_v3 = vld [vmem:[#allocation10 + $0xc0] sm:$0xff]  ;;  %v267_v5 = vld [vmem:[#allocation10 + $0xc8] sm:$0xff]  ;;  %v264_v7 = vld [vmem:[#allocation10 + $0xb0] sm:$0xff] }
  0x2e   :  { %207 = vmatpush.msra.mxu2 %v184_v35  ;;  %227 = vmatpush.msra.mxu3 %v185_v36  ;;  %v298_v4 = vld [vmem:[#allocation10 + $0x1c0] sm:$0xff]  ;;  %v299_v6 = vld [vmem:[#allocation10 + $0x1c8] sm:$0xff]  ;;  %v296_v8 = vld [vmem:[#allocation10 + $0x1b0] sm:$0xff] }
  0x2f   :  { %158 = vmatpush.msra.mxu1 %v135_v16  ;;  %308 = vmatpush.msrb.mxu0 %v268_v63  ;;  %v265_v9 = vld [vmem:[#allocation10 + $0xb8] sm:$0xff]  ;;  %v262_v11 = vld [vmem:[#allocation10 + $0xa0] sm:$0xff]  ;;  %v263_v13 = vld [vmem:[#allocation10 + $0xa8] sm:$0xff] }
  0x30   :  { %208 = vmatpush.msra.mxu2 %v182_v37  ;;  %228 = vmatpush.msra.mxu3 %v183_v38  ;;  %v297_v10 = vld [vmem:[#allocation10 + $0x1b8] sm:$0xff]  ;;  %v294_v12 = vld [vmem:[#allocation10 + $0x1a0] sm:$0xff]  ;;  %v295_v14 = vld [vmem:[#allocation10 + $0x1a8] sm:$0xff] }
  0x31   :  { %159 = vmatpush.msra.mxu1 %v134_v17  ;;  %309 = vmatpush.msrb.mxu0 %v266_v3  ;;  %v260_v15 = vld [vmem:[#allocation10 + $0x90] sm:$0xff]  ;;  %v261_v17 = vld [vmem:[#allocation10 + $0x98] sm:$0xff]  ;;  %v259_v21 = vld [vmem:[#allocation10 + $0x88] sm:$0xff] }
  0x32   :  { %209 = vmatpush.msra.mxu2 %v180_v39  ;;  %229 = vmatpush.msra.mxu3 %v181_v40  ;;  %v292_v16 = vld [vmem:[#allocation10 + $0x190] sm:$0xff]  ;;  %v291_v22 = vld [vmem:[#allocation10 + $0x188] sm:$0xff]  ;;  %v257_v25 = vld [vmem:[#allocation10 + $0x78] sm:$0xff] }
  0x33   :  { %160 = vmatpush.msra.mxu1 %v133_v18  ;;  %310 = vmatpush.msrb.mxu0 %v264_v7  ;;  %v293_v18 = vld [vmem:[#allocation10 + $0x198] sm:$0xff]  ;;  %v256_v23 = vld [vmem:[#allocation10 + $0x70] sm:$0xff]  ;;  %v254_v27 = vld [vmem:[#allocation10 + $0x60] sm:$0xff] }
  0x34   :  { %210 = vmatpush.msra.mxu2 %v178_v41  ;;  %230 = vmatpush.msra.mxu3 %v179_v42  ;;  %v288_v24 = vld [vmem:[#allocation10 + $0x170] sm:$0xff]  ;;  %v289_v26 = vld [vmem:[#allocation10 + $0x178] sm:$0xff]  ;;  %v286_v28 = vld [vmem:[#allocation10 + $0x160] sm:$0xff] }
  0x35   :  { %161 = vmatpush.msra.mxu1 %v132_v19  ;;  %311 = vmatpush.msrb.mxu0 %v262_v11  ;;  %v258_v19 = vld [vmem:[#allocation10 + $0x80] sm:$0xff]  ;;  %v255_v29 = vld [vmem:[#allocation10 + $0x68] sm:$0xff]  ;;  %v252_v31 = vld [vmem:[#allocation10 + $0x50] sm:$0xff] }
  0x36   :  { %211 = vmatpush.msra.mxu2 %v176_v43  ;;  %231 = vmatpush.msra.mxu3 %v177_v44  ;;  %v287_v30 = vld [vmem:[#allocation10 + $0x168] sm:$0xff]  ;;  %v284_v32 = vld [vmem:[#allocation10 + $0x150] sm:$0xff]  ;;  %v253_v33 = vld [vmem:[#allocation10 + $0x58] sm:$0xff] }
  0x37   :  { %162 = vmatpush.msra.mxu1 %v131_v20  ;;  %v290_v20 = vld [vmem:[#allocation10 + $0x180] sm:$0xff]  ;;  %312 = vmatpush.msrb.mxu0 %v260_v15  ;;  %v285_v34 = vld [vmem:[#allocation10 + $0x158] sm:$0xff]  ;;  %v251_v37 = vld [vmem:[#allocation10 + $0x48] sm:$0xff] }
  0x38   :  { %212 = vmatpush.msra.mxu2 %v174_v45  ;;  %232 = vmatpush.msra.mxu3 %v175_v46  ;;  %v250_v35 = vld [vmem:[#allocation10 + $0x40] sm:$0xff]  ;;  %v283_v38 = vld [vmem:[#allocation10 + $0x148] sm:$0xff]  ;;  %v248_v39 = vld [vmem:[#allocation10 + $0x30] sm:$0xff] }
  0x39   :  { %326 = vmatpush.msrb.mxu1 %v304_v56  ;;  %313 = vmatpush.msrb.mxu0 %v258_v19  ;;  %v282_v36 = vld [vmem:[#allocation10 + $0x140] sm:$0xff]  ;;  %v280_v40 = vld [vmem:[#allocation10 + $0x130] sm:$0xff]  ;;  %v249_v41 = vld [vmem:[#allocation10 + $0x38] sm:$0xff] }
  0x3a   :  { %213 = vmatpush.msra.mxu2 %v172_v47  ;;  %233 = vmatpush.msra.mxu3 %v173_v48  ;;  %v281_v42 = vld [vmem:[#allocation10 + $0x138] sm:$0xff]  ;;  %v246_v43 = vld [vmem:[#allocation10 + $0x20] sm:$0xff]  ;;  %v247_v45 = vld [vmem:[#allocation10 + $0x28] sm:$0xff] }
  0x3b   :  { %327 = vmatpush.msrb.mxu1 %v302_v60  ;;  %314 = vmatpush.msrb.mxu0 %v256_v23  ;;  %v278_v44 = vld [vmem:[#allocation10 + $0x120] sm:$0xff]  ;;  %v279_v46 = vld [vmem:[#allocation10 + $0x128] sm:$0xff] }
  0x3c   :  { %214 = vmatpush.msra.mxu2 %v170_v51  ;;  %234 = vmatpush.msra.mxu3 %v171_v52  ;;  %v245_v51 = vld [vmem:[#allocation10 + $0x18] sm:$0xff]  ;;  %v243_v55 = vld [vmem:[#allocation10 + $0x8] sm:$0xff] }
  0x3d   :  { %328 = vmatpush.msrb.mxu1 %v300_v0  ;;  %315 = vmatpush.msrb.mxu0 %v254_v27  ;;  %v277_v52 = vld [vmem:[#allocation10 + $0x118] sm:$0xff]  ;;  %v275_v56 = vld [vmem:[#allocation10 + $0x108] sm:$0xff] }
  0x3e   :  { %215 = vmatpush.msra.mxu2 %v168_v53  ;;  %235 = vmatpush.msra.mxu3 %v169_v54  ;;  %v242_v53 = vld [vmem:[#allocation10] sm:$0xff] }
  0x3f   :  { %329 = vmatpush.msrb.mxu1 %v298_v4  ;;  %316 = vmatpush.msrb.mxu0 %v252_v31  ;;  %v274_v54 = vld [vmem:[#allocation10 + $0x100] sm:$0xff] }
  0x40   :  { %346 = vmatpush.msrb.mxu2 %v273_v57  ;;  %366 = vmatpush.msrb.mxu3 %v305_v58 }
  0x41   :  { %330 = vmatpush.msrb.mxu1 %v296_v8  ;;  %317 = vmatpush.msrb.mxu0 %v250_v35 }
  0x42   :  { %347 = vmatpush.msrb.mxu2 %v271_v61  ;;  %367 = vmatpush.msrb.mxu3 %v303_v62 }
  0x43   :  { %331 = vmatpush.msrb.mxu1 %v294_v12  ;;  %318 = vmatpush.msrb.mxu0 %v248_v39 }
  0x44   :  { %348 = vmatpush.msrb.mxu2 %v269_v1  ;;  %368 = vmatpush.msrb.mxu3 %v301_v2 }
  0x45   :  { %332 = vmatpush.msrb.mxu1 %v292_v16  ;;  %319 = vmatpush.msrb.mxu0 %v246_v43 }
  0x46   :  { %349 = vmatpush.msrb.mxu2 %v267_v5  ;;  %369 = vmatpush.msrb.mxu3 %v299_v6 }
  0x47   :  { %333 = vmatpush.msrb.mxu1 %v290_v20 }
  0x48   :  { %350 = vmatpush.msrb.mxu2 %v265_v9  ;;  %370 = vmatpush.msrb.mxu3 %v297_v10 }
  0x49   :  { %334 = vmatpush.msrb.mxu1 %v288_v24 }
  0x4a   :  { %351 = vmatpush.msrb.mxu2 %v263_v13  ;;  %371 = vmatpush.msrb.mxu3 %v295_v14 }
  0x4b   :  { %335 = vmatpush.msrb.mxu1 %v286_v28 }
  0x4c   :  { %352 = vmatpush.msrb.mxu2 %v261_v17  ;;  %372 = vmatpush.msrb.mxu3 %v293_v18 }
  0x4d   :  { %336 = vmatpush.msrb.mxu1 %v284_v32 }
  0x4e   :  { %353 = vmatpush.msrb.mxu2 %v259_v21  ;;  %373 = vmatpush.msrb.mxu3 %v291_v22 }
  0x4f   :  { %337 = vmatpush.msrb.mxu1 %v282_v36 }
  0x50   :  { %354 = vmatpush.msrb.mxu2 %v257_v25  ;;  %374 = vmatpush.msrb.mxu3 %v289_v26 }
  0x51   :  { %338 = vmatpush.msrb.mxu1 %v280_v40 }
  0x52   :  { %355 = vmatpush.msrb.mxu2 %v255_v29  ;;  %375 = vmatpush.msrb.mxu3 %v287_v30 }
  0x53   :  { %339 = vmatpush.msrb.mxu1 %v278_v44 }
  0x54   :  { %356 = vmatpush.msrb.mxu2 %v253_v33  ;;  %376 = vmatpush.msrb.mxu3 %v285_v34 }
  0x56   :  { %357 = vmatpush.msrb.mxu2 %v251_v37  ;;  %377 = vmatpush.msrb.mxu3 %v283_v38 }
  0x58   :  { %358 = vmatpush.msrb.mxu2 %v249_v41  ;;  %378 = vmatpush.msrb.mxu3 %v281_v42 }
  0x5a   :  { %359 = vmatpush.msrb.mxu2 %v247_v45  ;;  %379 = vmatpush.msrb.mxu3 %v279_v46 }
  0x5c   :  { %360 = vmatpush.msrb.mxu2 %v245_v51  ;;  %380 = vmatpush.msrb.mxu3 %v277_v52 }
  0x5e   :  { %361 = vmatpush.msrb.mxu2 %v243_v55  ;;  %381 = vmatpush.msrb.mxu3 %v275_v56 }
  0x9c   :  { %v127_v49 = vpop.f32.mrf.mxu0 }
  0x9d   :  { %v130_v50 = vmax.f32 %v127_v49, 0.0  ;;  %v244_v49 = vld [vmem:[#allocation10 + $0x10] sm:$0xff] }
  0x9e   :  { %320 = vmatpush.msrb.mxu0 %v244_v49 }
  0x9f   :  { %163 = vmatmul.f32.vlgmr.msra.gmra.mxu1 %v130_v50  ;;  %v276_v50 = vld [vmem:[#allocation10 + $0x110] sm:$0xff] }
  0xa0   :  { %340 = vmatpush.msrb.mxu1 %v276_v50  ;;  %321 = vmatpush.msrb.mxu0 %v242_v53 }
  0xa2   :  { %341 = vmatpush.msrb.mxu1 %v274_v54 }
 0x11c   :  { %v164_v47 = vpop.f32.mrf.mxu1 }
 0x11d   :  { %v167_v48 = vmax.f32 %v164_v47, 0.0 }
 0x11f   :  { %216 = vmatmul.f32.vlgmr.msra.gmra.mxu2 %v167_v48  ;;  %236 = vmatmul.f32.vlgmr.msra.gmra.mxu3 %v167_v48 }
 0x1a2   :  { %v217_v57 = vpop.f32.mrf.mxu2  ;;  %v237_v58 = vpop.f32.mrf.mxu3 }
 0x1a3   :  { %v240_v59 = vmax.f32 %v217_v57, 0.0  ;;  %v241_v60 = vmax.f32 %v237_v58, 0.0 }
 0x1a5   :  { %322 = vmatmul.f32.vlgmr.msrb.gmra.mxu0 %v240_v59  ;;  %342 = vmatmul.f32.vlgmr.msrb.gmra.mxu1 %v241_v60 }
 0x1a6   :  { %362 = vmatmul.f32.vlgmr.msrb.gmra.mxu2 %v240_v59  ;;  %382 = vmatmul.f32.vlgmr.msrb.gmra.mxu3 %v241_v60 }
 0x222   :  { %v323_v61 = vpop.f32.mrf.mxu0  ;;  %v343_v62 = vpop.f32.mrf.mxu1 }
 0x223   :  { %v344_v63 = vadd.f32 %v343_v62, %v323_v61 }
 0x225   :  { %v386_v0 = vmax.f32 %v344_v63, 0.0 }
 0x227   :  { %388 = vst [vmem:[#allocation11] sm:$0xff] %v386_v0 }
 0x229   :  { %v363_v1 = vpop.f32.mrf.mxu2  ;;  %v383_v2 = vpop.f32.mrf.mxu3 }
 0x22a   :  { %v384_v3 = vadd.f32 %v383_v2, %v363_v1 }
 0x22c   :  { %v387_v4 = vmax.f32 %v384_v3, 0.0 }
 0x22e   :  { %389 = vst [vmem:[#allocation11 + $0x8] sm:$0xff] %v387_v4 }
 0x22f   :  { %400 = dma.vmem_to_hbm [thread:$0]  %s396_s4, 256, %s398_s21, [#allocation4]  }
 0x230   :  { %571 = dma.done.wait [#allocation4], 256  }
 0x231   :  { %572 = vsyncadd [#allocation4], 4294967040 }
 0x232   :  { %405 = vsyncpa [#allocation3], 1 }
 0x233   :  { %406 = vsyncpa [#allocation6], 1 }
 0x234   :  { %407 = vsyncpa [#allocation9], 1 }
 0x235   :  { %408 = vsyncpa [#allocation4], 1 }

</bundles_post_ra>
